<compile_context>
chip_gen: v5e
topology: v5e:2x2
jax: 0.10.0
libtpu: 0.0.40
codegen_flags: <defaults>
</compile_context>

<pallas_src>
import functools

import jax
import jax.numpy as jnp
from jax import lax
from jax.experimental import pallas as pl
from jax.experimental.pallas import tpu as pltpu


def attention_p_kernel(x_ref, w1p_ref, b1p_ref, w2pt_ref, b2p_ref, o_ref, s_ref,
                       *, n_heads, seq_len):
    """One grid step processes a block of BB batches — no per-batch loop.

    x_ref:    (BB, L*Din)    one row per batch, its (L, Din) slice flattened
    w1p_ref:  (L*Din, L*Dd)  block-diagonal packing of fc1 weight (L copies)
    b1p_ref:  (1, L*Dd)      fc1 bias tiled L times (f32)
    w2pt_ref: (L*H, L*Dd)    block-diagonal packing of fc2 weight, pre-transposed
    b2p_ref:  (L*H, 1)       fc2 bias tiled L times (f32 column)
    o_ref:    (L*H, BB)      probabilities, lane-dense (batch on lanes)
    s_ref:    (L*H, BB)      f32 scratch holding the pre-softmax scores
    """
    H, L = n_heads, seq_len

    # fc1 + tanh for the whole batch block: ONE native MXU matmul (x streams in its
    # source dtype, f32 accumulation).  Result is fully lane-dense: (BB, L*Dd=128).
    h = jnp.tanh(
        jnp.dot(x_ref[...], w1p_ref[...], preferred_element_type=jnp.float32)
        + b1p_ref[...]
    )

    # fc2, emitted directly in (L*H, BB) layout (batch on lanes) via an n-t
    # dot_general — no in-kernel transpose, lane-dense softmax and store.
    s_ref[...] = lax.dot_general(
        w2pt_ref[...], h.astype(w2pt_ref.dtype),
        (((1,), (1,)), ((), ())),
        preferred_element_type=jnp.float32,
    ) + b2p_ref[...]

    # Softmax over the sequence axis, vectorized across (head, batch): row l*H + h
    # of s_ref holds head h's score at position l.  L is small and static, so the
    # reduction unrolls into elementwise max/add over L sublane slices (pure VPU).
    m = s_ref[0:H, :]
    for l in range(1, L):
        m = jnp.maximum(m, s_ref[l * H:(l + 1) * H, :])
    es = []
    denom = jnp.zeros_like(m)
    for l in range(L):
        e = jnp.exp(s_ref[l * H:(l + 1) * H, :] - m)
        es.append(e)
        denom = denom + e
    inv = 1.0 / denom          # exact reciprocal (tiny (H, BB) array; review item)
    for l in range(L):
        o_ref[l * H:(l + 1) * H, :] = (es[l] * inv).astype(o_ref.dtype)


def _pad_to(n, m):
    return -(-n // m) * m


def _padded_tile_bytes(rows, cols, dtype):
    """Bytes of a (rows, cols) tile after (sublane, lane) padding."""
    it = jnp.dtype(dtype).itemsize
    sub = 8 * max(1, 4 // it)          # 8 rows/tile for f32, 16 for bf16
    return _pad_to(max(rows, 1), sub) * _pad_to(max(cols, 1), 128) * it


def _estimate_vmem_bytes(bb, L, Din, Dd, H, cdtype):
    """Padded-aware VMEM estimate for one grid step (incl. double buffers)."""
    f32 = jnp.float32
    x_tiles = 2 * _padded_tile_bytes(bb, L * Din, cdtype)            # double-buffered
    out_tiles = 2 * _padded_tile_bytes(L * H, bb, f32)               # double-buffered
    weights = 2 * (_padded_tile_bytes(L * Din, L * Dd, cdtype)
                   + _padded_tile_bytes(L * H, L * Dd, cdtype)
                   + _padded_tile_bytes(1, L * Dd, f32)
                   + _padded_tile_bytes(L * H, 1, f32))
    scratch = _padded_tile_bytes(L * H, bb, f32)                     # score scratch
    live = (_padded_tile_bytes(bb, L * Dd, f32)                      # h (f32)
            + _padded_tile_bytes(bb, L * Dd, cdtype)                 # h cast for MXU
            + (L + 3) * _padded_tile_bytes(H, bb, f32))              # softmax temps
    return x_tiles + out_tiles + weights + scratch + live


def _choose_batch_block(B, L, Din, Dd, H, cdtype, vmem_budget_bytes):
    """Largest lane-aligned (multiple-of-128) batch block that divides B and fits
    the PADDED VMEM budget; keeps >=2 grid steps for large B (v7x megacore)."""
    cands = [bb for bb in range(128, B + 1, 128) if B % bb == 0]
    if B >= 256:
        two_step = [bb for bb in cands if bb <= B // 2]
        cands = two_step or cands
    best = None
    for bb in cands:                            # ascending -> keep largest that fits
        if _estimate_vmem_bytes(bb, L, Din, Dd, H, cdtype) <= vmem_budget_bytes:
            best = bb
    if best is not None:
        return best
    if cands:
        return cands[0]
    # No 128-aligned divisor (small / odd B): whole batch in one block
    # (block == full array dims is always a legal BlockSpec).
    return B


def attention_p(x, w1, b1, w2, b2, *,
                compute_dtype=jnp.bfloat16,
                vmem_budget_bytes=24 * 1024 * 1024):
    """x: (B, L, input_dim). Returns attention of shape (B, n_heads, L), float32."""
    B, L, Din = x.shape
    Dd = w1.shape[1]
    H = w2.shape[1]
    cd = jnp.dtype(compute_dtype)

    BB = _choose_batch_block(B, L, Din, Dd, H, cd, vmem_budget_bytes)
    grid = (B // BB,)

    # MXU inputs in compute dtype (bf16 default); biases / elementwise math in f32.
    x2 = x.astype(cd).reshape(B, L * Din)         # minor-dim merge: free in XLA
    eye = jnp.eye(L, dtype=cd)
    # TODO(synk): for long sequences the L-packed weights grow as O(L^2); switch to
    # a two-level (sequence-tiled) pipeline instead of kron-packing in that regime.
    w1p = jnp.kron(eye, w1.astype(cd))            # (L*Din, L*Dd) block-diagonal
    w2pt = jnp.kron(eye, w2.T.astype(cd))         # (L*H,  L*Dd) block-diag, pre-T
    b1p = jnp.tile(b1.astype(jnp.float32), L).reshape(1, L * Dd)
    b2p = jnp.tile(b2.astype(jnp.float32), L).reshape(L * H, 1)

    est = _estimate_vmem_bytes(BB, L, Din, Dd, H, cd)
    vmem_limit = int(min(max(int(est * 1.3), 16 * 1024 * 1024), 48 * 1024 * 1024))

    kernel = functools.partial(attention_p_kernel, n_heads=H, seq_len=L)

    out_t = pl.pallas_call(
        kernel,
        out_shape=jax.ShapeDtypeStruct((L * H, B), jnp.float32),
        grid_spec=pltpu.PrefetchScalarGridSpec(
            num_scalar_prefetch=0,
            grid=grid,
            in_specs=[
                pl.BlockSpec((BB, L * Din), lambda i: (i, 0)),       # x
                pl.BlockSpec((L * Din, L * Dd), lambda i: (0, 0)),   # W1 packed
                pl.BlockSpec((1, L * Dd), lambda i: (0, 0)),         # b1 packed
                pl.BlockSpec((L * H, L * Dd), lambda i: (0, 0)),     # W2 packed^T
                pl.BlockSpec((L * H, 1), lambda i: (0, 0)),          # b2 packed
            ],
            out_specs=pl.BlockSpec((L * H, BB), lambda i: (0, i)),
            scratch_shapes=[pltpu.VMEM((L * H, BB), jnp.float32)],
        ),
        compiler_params=pltpu.CompilerParams(
            dimension_semantics=("parallel",),   # batch blocks shard across v7x TCs
            vmem_limit_bytes=vmem_limit,
        ),
    )(x2, w1p, b1p, w2pt, b2p)

    # (L*H, B) -> (B, H, L); the output is ~8x smaller than x, so this is cheap.
    return out_t.reshape(L, H, B).transpose(2, 1, 0)


def reference_attention_p(x, w1, b1, w2, b2):
    """Pure-JAX reference mirroring the PyTorch forward."""
    h = jnp.tanh(jnp.einsum("bld,de->ble", x, w1) + b1)
    s = jnp.einsum("ble,eh->blh", h, w2) + b2
    p = jax.nn.softmax(s, axis=1)            # softmax over the sequence dim
    return jnp.transpose(p, (0, 2, 1))       # (B, n_heads, L)


if __name__ == "__main__":
    # Module-consistent shapes: input_dim=32, dense_dim=16, n_heads=4, seq=8.
    Din, Dd, H, L = 32, 16, 4, 8
    key = jax.random.PRNGKey(0)
    kx, kw1, kb1, kw2, kb2, kx2 = jax.random.split(key, 6)

    w1 = jax.random.normal(kw1, (Din, Dd), dtype=jnp.float32) * (1.0 / Din ** 0.5)
    b1 = jax.random.normal(kb1, (Dd,), dtype=jnp.float32) * 0.01
    w2 = jax.random.normal(kw2, (Dd, H), dtype=jnp.float32) * (1.0 / Dd ** 0.5)
    b2 = jax.random.normal(kb2, (H,), dtype=jnp.float32) * 0.01

    # Case 1: tiny batch (whole batch in one grid step), f32 compute -> tight check.
    B = 2
    x = jax.random.normal(kx, (B, L, Din), dtype=jnp.float32)
    out = attention_p(x, w1, b1, w2, b2, compute_dtype=jnp.float32)
    jax.block_until_ready(out)
    ref = reference_attention_p(x, w1, b1, w2, b2)
    assert out.shape == (B, H, L), out.shape
    assert jnp.allclose(out, ref, atol=2e-3, rtol=2e-3), "mismatch vs reference (f32)"
    assert jnp.allclose(jnp.sum(out, axis=-1), 1.0, atol=1e-3)

    # Case 2: batch large enough for a lane-aligned multi-step grid (BB=128, 2
    # steps -> exercises the block index maps / both v7x TCs), default bf16 inputs.
    B2 = 256
    x2 = jax.random.normal(kx2, (B2, L, Din), dtype=jnp.float32)
    out2 = attention_p(x2, w1, b1, w2, b2)       # compute_dtype defaults to bfloat16
    jax.block_until_ready(out2)
    ref2 = reference_attention_p(x2, w1, b1, w2, b2)
    assert out2.shape == (B2, H, L), out2.shape
    assert jnp.allclose(out2, ref2, atol=3e-2, rtol=3e-2), "mismatch vs reference (bf16)"
    assert jnp.allclose(jnp.sum(out2, axis=-1), 1.0, atol=1e-3)

    print("KERNEL_OK")
</pallas_src>

<mosaic_0001>
module attributes {stable_mosaic.version = 11 : i64} {
  func.func @attention_p_kernel(%arg0: i32, %arg1: memref<2x256xf32, #tpu.memory_space<vmem>>, %arg2: memref<256x128xf32, #tpu.memory_space<vmem>>, %arg3: memref<1x128xf32, #tpu.memory_space<vmem>>, %arg4: memref<32x128xf32, #tpu.memory_space<vmem>>, %arg5: memref<32x1xf32, #tpu.memory_space<vmem>>, %arg6: memref<32x2xf32, #tpu.memory_space<vmem>>, %arg7: memref<32x2xf32, #tpu.memory_space<vmem>>) attributes {dimension_semantics = [#tpu.dimension_semantics<parallel>], iteration_bounds = array<i64: 1>, scalar_prefetch = 0 : i64, scratch_operands = 1 : i64, tpu.core_type = #tpu.core_type<tc>, window_params = [{transform_indices = @transform_0, window_bounds = array<i64: 2, 256>}, {pipeline_mode = #tpu.pipeline_mode<synchronous>, transform_indices = @transform_1, window_bounds = array<i64: 256, 128>}, {pipeline_mode = #tpu.pipeline_mode<synchronous>, transform_indices = @transform_2, window_bounds = array<i64: 1, 128>}, {pipeline_mode = #tpu.pipeline_mode<synchronous>, transform_indices = @transform_3, window_bounds = array<i64: 32, 128>}, {pipeline_mode = #tpu.pipeline_mode<synchronous>, transform_indices = @transform_4, window_bounds = array<i64: 32, 1>}, {transform_indices = @transform_5, window_bounds = array<i64: 32, 2>}]} {
    %c0 = arith.constant 0 : index
    %c0_0 = arith.constant 0 : index
    %0 = vector.load %arg1[%c0, %c0_0] : memref<2x256xf32, #tpu.memory_space<vmem>>, vector<2x256xf32>
    %c0_1 = arith.constant 0 : index
    %c0_2 = arith.constant 0 : index
    %1 = vector.load %arg2[%c0_1, %c0_2] : memref<256x128xf32, #tpu.memory_space<vmem>>, vector<256x128xf32>
    %cst = arith.constant dense<0.000000e+00> : vector<2x128xf32>
    %2 = tpu.matmul %0, %1, %cst {dimension_numbers = #tpu.dot_dimension_numbers<[1], [0], [0], [1], [0, 0, 1, 1], [], []>} : vector<2x256xf32>, vector<256x128xf32>, vector<2x128xf32> -> vector<2x128xf32>
    %c0_3 = arith.constant 0 : index
    %c0_4 = arith.constant 0 : index
    %3 = vector.load %arg3[%c0_3, %c0_4] : memref<1x128xf32, #tpu.memory_space<vmem>>, vector<1x128xf32>
    %4 = vector.broadcast %3 : vector<1x128xf32> to vector<2x128xf32>
    %5 = arith.addf %2, %4 : vector<2x128xf32>
    %6 = math.tanh %5 : vector<2x128xf32>
    %c0_5 = arith.constant 0 : index
    %c0_6 = arith.constant 0 : index
    %7 = vector.load %arg4[%c0_5, %c0_6] : memref<32x128xf32, #tpu.memory_space<vmem>>, vector<32x128xf32>
    %cst_7 = arith.constant dense<0.000000e+00> : vector<32x2xf32>
    %8 = tpu.matmul %7, %6, %cst_7 {dimension_numbers = #tpu.dot_dimension_numbers<[1], [1], [0], [0], [0, 0, 1, 0], [], []>} : vector<32x128xf32>, vector<2x128xf32>, vector<32x2xf32> -> vector<32x2xf32>
    %c0_8 = arith.constant 0 : index
    %c0_9 = arith.constant 0 : index
    %9 = vector.load %arg5[%c0_8, %c0_9] : memref<32x1xf32, #tpu.memory_space<vmem>>, vector<32x1xf32>
    %10 = vector.broadcast %9 : vector<32x1xf32> to vector<32x2xf32>
    %11 = arith.addf %8, %10 : vector<32x2xf32>
    %c0_10 = arith.constant 0 : index
    %c0_11 = arith.constant 0 : index
    %12 = vector.load %arg7[%c0_10, %c0_11] : memref<32x2xf32, #tpu.memory_space<vmem>>, vector<32x2xf32>
    tpu.vector_store %arg7[%c0_10, %c0_11], %11 {strides = array<i32>} : memref<32x2xf32, #tpu.memory_space<vmem>>, vector<32x2xf32>,
    %c0_12 = arith.constant 0 : index
    %c0_13 = arith.constant 0 : index
    %13 = vector.load %arg7[%c0_12, %c0_13] : memref<32x2xf32, #tpu.memory_space<vmem>>, vector<4x2xf32>
    %c4 = arith.constant 4 : index
    %c0_14 = arith.constant 0 : index
    %14 = vector.load %arg7[%c4, %c0_14] : memref<32x2xf32, #tpu.memory_space<vmem>>, vector<4x2xf32>
    %15 = arith.maximumf %13, %14 : vector<4x2xf32>
    %c8 = arith.constant 8 : index
    %c0_15 = arith.constant 0 : index
    %16 = vector.load %arg7[%c8, %c0_15] : memref<32x2xf32, #tpu.memory_space<vmem>>, vector<4x2xf32>
    %17 = arith.maximumf %15, %16 : vector<4x2xf32>
    %c12 = arith.constant 12 : index
    %c0_16 = arith.constant 0 : index
    %18 = vector.load %arg7[%c12, %c0_16] : memref<32x2xf32, #tpu.memory_space<vmem>>, vector<4x2xf32>
    %19 = arith.maximumf %17, %18 : vector<4x2xf32>
    %c16 = arith.constant 16 : index
    %c0_17 = arith.constant 0 : index
    %20 = vector.load %arg7[%c16, %c0_17] : memref<32x2xf32, #tpu.memory_space<vmem>>, vector<4x2xf32>
    %21 = arith.maximumf %19, %20 : vector<4x2xf32>
    %c20 = arith.constant 20 : index
    %c0_18 = arith.constant 0 : index
    %22 = vector.load %arg7[%c20, %c0_18] : memref<32x2xf32, #tpu.memory_space<vmem>>, vector<4x2xf32>
    %23 = arith.maximumf %21, %22 : vector<4x2xf32>
    %c24 = arith.constant 24 : index
    %c0_19 = arith.constant 0 : index
    %24 = vector.load %arg7[%c24, %c0_19] : memref<32x2xf32, #tpu.memory_space<vmem>>, vector<4x2xf32>
    %25 = arith.maximumf %23, %24 : vector<4x2xf32>
    %c28 = arith.constant 28 : index
    %c0_20 = arith.constant 0 : index
    %26 = vector.load %arg7[%c28, %c0_20] : memref<32x2xf32, #tpu.memory_space<vmem>>, vector<4x2xf32>
    %27 = arith.maximumf %25, %26 : vector<4x2xf32>
    %cst_21 = arith.constant 0.000000e+00 : f32
    %28 = vector.broadcast %cst_21 : f32 to vector<4x2xf32>
    %c0_22 = arith.constant 0 : index
    %c0_23 = arith.constant 0 : index
    %29 = vector.load %arg7[%c0_22, %c0_23] : memref<32x2xf32, #tpu.memory_space<vmem>>, vector<4x2xf32>
    %30 = arith.subf %29, %27 : vector<4x2xf32>
    %31 = math.exp %30 : vector<4x2xf32>
    %32 = arith.addf %28, %31 : vector<4x2xf32>
    %c4_24 = arith.constant 4 : index
    %c0_25 = arith.constant 0 : index
    %33 = vector.load %arg7[%c4_24, %c0_25] : memref<32x2xf32, #tpu.memory_space<vmem>>, vector<4x2xf32>
    %34 = arith.subf %33, %27 : vector<4x2xf32>
    %35 = math.exp %34 : vector<4x2xf32>
    %36 = arith.addf %32, %35 : vector<4x2xf32>
    %c8_26 = arith.constant 8 : index
    %c0_27 = arith.constant 0 : index
    %37 = vector.load %arg7[%c8_26, %c0_27] : memref<32x2xf32, #tpu.memory_space<vmem>>, vector<4x2xf32>
    %38 = arith.subf %37, %27 : vector<4x2xf32>
    %39 = math.exp %38 : vector<4x2xf32>
    %40 = arith.addf %36, %39 : vector<4x2xf32>
    %c12_28 = arith.constant 12 : index
    %c0_29 = arith.constant 0 : index
    %41 = vector.load %arg7[%c12_28, %c0_29] : memref<32x2xf32, #tpu.memory_space<vmem>>, vector<4x2xf32>
    %42 = arith.subf %41, %27 : vector<4x2xf32>
    %43 = math.exp %42 : vector<4x2xf32>
    %44 = arith.addf %40, %43 : vector<4x2xf32>
    %c16_30 = arith.constant 16 : index
    %c0_31 = arith.constant 0 : index
    %45 = vector.load %arg7[%c16_30, %c0_31] : memref<32x2xf32, #tpu.memory_space<vmem>>, vector<4x2xf32>
    %46 = arith.subf %45, %27 : vector<4x2xf32>
    %47 = math.exp %46 : vector<4x2xf32>
    %48 = arith.addf %44, %47 : vector<4x2xf32>
    %c20_32 = arith.constant 20 : index
    %c0_33 = arith.constant 0 : index
    %49 = vector.load %arg7[%c20_32, %c0_33] : memref<32x2xf32, #tpu.memory_space<vmem>>, vector<4x2xf32>
    %50 = arith.subf %49, %27 : vector<4x2xf32>
    %51 = math.exp %50 : vector<4x2xf32>
    %52 = arith.addf %48, %51 : vector<4x2xf32>
    %c24_34 = arith.constant 24 : index
    %c0_35 = arith.constant 0 : index
    %53 = vector.load %arg7[%c24_34, %c0_35] : memref<32x2xf32, #tpu.memory_space<vmem>>, vector<4x2xf32>
    %54 = arith.subf %53, %27 : vector<4x2xf32>
    %55 = math.exp %54 : vector<4x2xf32>
    %56 = arith.addf %52, %55 : vector<4x2xf32>
    %c28_36 = arith.constant 28 : index
    %c0_37 = arith.constant 0 : index
    %57 = vector.load %arg7[%c28_36, %c0_37] : memref<32x2xf32, #tpu.memory_space<vmem>>, vector<4x2xf32>
    %58 = arith.subf %57, %27 : vector<4x2xf32>
    %59 = math.exp %58 : vector<4x2xf32>
    %60 = arith.addf %56, %59 : vector<4x2xf32>
    %cst_38 = arith.constant 1.000000e+00 : f32
    %61 = vector.broadcast %cst_38 : f32 to vector<4x2xf32>
    %62 = arith.divf %61, %60 : vector<4x2xf32>
    %63 = arith.mulf %31, %62 : vector<4x2xf32>
    %c0_39 = arith.constant 0 : index
    %c0_40 = arith.constant 0 : index
    %64 = vector.load %arg6[%c0_39, %c0_40] : memref<32x2xf32, #tpu.memory_space<vmem>>, vector<4x2xf32>
    tpu.vector_store %arg6[%c0_39, %c0_40], %63 {strides = array<i32>} : memref<32x2xf32, #tpu.memory_space<vmem>>, vector<4x2xf32>,
    %65 = arith.mulf %35, %62 : vector<4x2xf32>
    %c4_41 = arith.constant 4 : index
    %c0_42 = arith.constant 0 : index
    %66 = vector.load %arg6[%c4_41, %c0_42] : memref<32x2xf32, #tpu.memory_space<vmem>>, vector<4x2xf32>
    tpu.vector_store %arg6[%c4_41, %c0_42], %65 {strides = array<i32>} : memref<32x2xf32, #tpu.memory_space<vmem>>, vector<4x2xf32>,
    %67 = arith.mulf %39, %62 : vector<4x2xf32>
    %c8_43 = arith.constant 8 : index
    %c0_44 = arith.constant 0 : index
    %68 = vector.load %arg6[%c8_43, %c0_44] : memref<32x2xf32, #tpu.memory_space<vmem>>, vector<4x2xf32>
    tpu.vector_store %arg6[%c8_43, %c0_44], %67 {strides = array<i32>} : memref<32x2xf32, #tpu.memory_space<vmem>>, vector<4x2xf32>,
    %69 = arith.mulf %43, %62 : vector<4x2xf32>
    %c12_45 = arith.constant 12 : index
    %c0_46 = arith.constant 0 : index
    %70 = vector.load %arg6[%c12_45, %c0_46] : memref<32x2xf32, #tpu.memory_space<vmem>>, vector<4x2xf32>
    tpu.vector_store %arg6[%c12_45, %c0_46], %69 {strides = array<i32>} : memref<32x2xf32, #tpu.memory_space<vmem>>, vector<4x2xf32>,
    %71 = arith.mulf %47, %62 : vector<4x2xf32>
    %c16_47 = arith.constant 16 : index
    %c0_48 = arith.constant 0 : index
    %72 = vector.load %arg6[%c16_47, %c0_48] : memref<32x2xf32, #tpu.memory_space<vmem>>, vector<4x2xf32>
    tpu.vector_store %arg6[%c16_47, %c0_48], %71 {strides = array<i32>} : memref<32x2xf32, #tpu.memory_space<vmem>>, vector<4x2xf32>,
    %73 = arith.mulf %51, %62 : vector<4x2xf32>
    %c20_49 = arith.constant 20 : index
    %c0_50 = arith.constant 0 : index
    %74 = vector.load %arg6[%c20_49, %c0_50] : memref<32x2xf32, #tpu.memory_space<vmem>>, vector<4x2xf32>
    tpu.vector_store %arg6[%c20_49, %c0_50], %73 {strides = array<i32>} : memref<32x2xf32, #tpu.memory_space<vmem>>, vector<4x2xf32>,
    %75 = arith.mulf %55, %62 : vector<4x2xf32>
    %c24_51 = arith.constant 24 : index
    %c0_52 = arith.constant 0 : index
    %76 = vector.load %arg6[%c24_51, %c0_52] : memref<32x2xf32, #tpu.memory_space<vmem>>, vector<4x2xf32>
    tpu.vector_store %arg6[%c24_51, %c0_52], %75 {strides = array<i32>} : memref<32x2xf32, #tpu.memory_space<vmem>>, vector<4x2xf32>,
    %77 = arith.mulf %59, %62 : vector<4x2xf32>
    %c28_53 = arith.constant 28 : index
    %c0_54 = arith.constant 0 : index
    %78 = vector.load %arg6[%c28_53, %c0_54] : memref<32x2xf32, #tpu.memory_space<vmem>>, vector<4x2xf32>
    tpu.vector_store %arg6[%c28_53, %c0_54], %77 {strides = array<i32>} : memref<32x2xf32, #tpu.memory_space<vmem>>, vector<4x2xf32>,
    return
  }
  func.func @transform_0(%arg0: i32) -> (i32, i32) {
    %c0_i32 = arith.constant 0 : i32
    %c0_i32_0 = arith.constant 0 : i32
    return %arg0, %c0_i32 : i32, i32
  }
  func.func @transform_1(%arg0: i32) -> (i32, i32) {
    %c0_i32 = arith.constant 0 : i32
    %c0_i32_0 = arith.constant 0 : i32
    %c0_i32_1 = arith.constant 0 : i32
    return %c0_i32, %c0_i32_0 : i32, i32
  }
  func.func @transform_2(%arg0: i32) -> (i32, i32) {
    %c0_i32 = arith.constant 0 : i32
    %c0_i32_0 = arith.constant 0 : i32
    %c0_i32_1 = arith.constant 0 : i32
    return %c0_i32, %c0_i32_0 : i32, i32
  }
  func.func @transform_3(%arg0: i32) -> (i32, i32) {
    %c0_i32 = arith.constant 0 : i32
    %c0_i32_0 = arith.constant 0 : i32
    %c0_i32_1 = arith.constant 0 : i32
    return %c0_i32, %c0_i32_0 : i32, i32
  }
  func.func @transform_4(%arg0: i32) -> (i32, i32) {
    %c0_i32 = arith.constant 0 : i32
    %c0_i32_0 = arith.constant 0 : i32
    %c0_i32_1 = arith.constant 0 : i32
    return %c0_i32, %c0_i32_0 : i32, i32
  }
  func.func @transform_5(%arg0: i32) -> (i32, i32) {
    %c0_i32 = arith.constant 0 : i32
    %c0_i32_0 = arith.constant 0 : i32
    return %c0_i32, %arg0 : i32, i32
  }
}

</mosaic_0001>

<bundles_post_ra>
// kernel: tpu_custom_call.1
= control target key start
LH: loop header
LB: loop body
LE: loop exit
PB: predicated region body
PF: predicated region fallthrough
CT: control target
= control target key end

     0   :  { %10 = vsyncpa [#allocation4], 0  ;;  %s465_s0 = inlined_call_operand.hbm [shape: f32[2,256], index: 0, kind: input, shape index: {}]   ;;  %s466_s1 = inlined_call_operand.hbm [shape: f32[256,128], index: 1, kind: input, shape index: {}]   ;;  %s467_s2 = inlined_call_operand.vmem [shape: f32[1,128], index: 2, kind: input, shape index: {}]   ;;  %s468_s3 = inlined_call_operand.vmem [shape: f32[32,128], index: 3, kind: input, shape index: {}]   ;;  %s469_s4 = inlined_call_operand.vmem [shape: f32[32,1], index: 4, kind: input, shape index: {}]   ;;  %s470_s5 = inlined_call_operand.vmem [shape: f32[32,2], index: 5, kind: output, shape index: {}]  }
   0x1   :  { %s17_s20 = sshll.u32 %s465_s0, 4  ;;  %s18_s20 = int_to_ptr.hbm [resolvable:$true] %s17_s20 }
   0x2   :  { %11 = vsyncpa [#allocation6], 0  ;;  %s361_s21 = smov [#allocation3]   ;;  %s27_s25 = sshll.u32 %s466_s1, 4  ;;  %s28_s25 = int_to_ptr.hbm [resolvable:$true] %s27_s25 }
   0x3   :  { %s19_s22 = sshll.u32 %s361_s21, 4  ;;  %s362_s26 = smov [#allocation5]   ;;  %s20_s22 = int_to_ptr.vmem [resolvable:$true] %s19_s22 }
   0x4   :  { %22 = dma.hbm_to_vmem [thread:$0]  %s18_s20, 64, %s20_s22, [#allocation4]  }
   0x5   :  { %s29_s27 = sshll.u32 %s362_s26, 4  ;;  %s363_s28 = smov 128   ;;  %s30_s27 = int_to_ptr.vmem [resolvable:$true] %s29_s27 }
   0x6   :  { %s364_s29 = smov 8  }
   0x7   :  { %35 = dma.hbm_to_vmem [thread:$0]  %s28_s25, 4096, %s30_s27, [#allocation6], %s363_s28, %s363_s28, %s364_s29  }
   0x8   :  { %357 = dma.done.wait [#allocation4], 64  }
   0x9   :  { %358 = vsyncadd [#allocation4], 4294967232 }
   0xa   :  { %359 = dma.done.wait [#allocation6], 4096  }
   0xb   :  { %360 = vsyncadd [#allocation6], 4294963200  ;;  %v66_v0 = vld [vmem:[#allocation5 + $0x78] sm:$0xff]  ;;  %v65_v1 = vld [vmem:[#allocation5 + $0x70] sm:$0xff]  ;;  %v365_v35 = vmov 0   ;;  %vm191_vm0 = vcmask 15360  }
   0xc   :  { %v82_v2 = vld [vmem:[#allocation5 + $0xf8] sm:$0xff]  ;;  %93 = vmatpush.msra.mxu0 %v66_v0  ;;  %v81_v3 = vld [vmem:[#allocation5 + $0xf0] sm:$0xff]  ;;  %v64_v4 = vld [vmem:[#allocation5 + $0x68] sm:$0xff]  ;;  %286 = vset.pattern.permute.xlu0 %v365_v35  ;;  %vm259_vm5 = vcmask 11264  }
   0xd   :  { %113 = vmatpush.msra.mxu1 %v82_v2  ;;  %v80_v5 = vld [vmem:[#allocation5 + $0xe8] sm:$0xff]  ;;  %v63_v6 = vld [vmem:[#allocation5 + $0x60] sm:$0xff]  ;;  %v62_v8 = vld [vmem:[#allocation5 + $0x58] sm:$0xff]  ;;  %287 = vset.pattern.permute.xlu1 %v365_v35 }
   0xe   :  { %94 = vmatpush.msra.mxu0 %v65_v1  ;;  %v79_v7 = vld [vmem:[#allocation5 + $0xe0] sm:$0xff]  ;;  %v78_v9 = vld [vmem:[#allocation5 + $0xd8] sm:$0xff]  ;;  %v61_v10 = vld [vmem:[#allocation5 + $0x50] sm:$0xff] }
   0xf   :  { %114 = vmatpush.msra.mxu1 %v81_v3  ;;  %v77_v11 = vld [vmem:[#allocation5 + $0xd0] sm:$0xff]  ;;  %v60_v12 = vld [vmem:[#allocation5 + $0x48] sm:$0xff]  ;;  %v50_v14 = vld [vmem:[#allocation3] sm:$0xf] }
  0x10   :  { %95 = vmatpush.msra.mxu0 %v64_v4  ;;  %v76_v13 = vld [vmem:[#allocation5 + $0xc8] sm:$0xff]  ;;  %88 = vst [vmem:[#allocation1] ss:$4 sm:$0xff] %v50_v14  ;;  %v59_v15 = vld [vmem:[#allocation5 + $0x40] sm:$0xff]  ;;  %v58_v17 = vld [vmem:[#allocation5 + $0x38] sm:$0xff] }
  0x11   :  { %115 = vmatpush.msra.mxu1 %v80_v5  ;;  %v75_v16 = vld [vmem:[#allocation5 + $0xc0] sm:$0xff]  ;;  %v74_v18 = vld [vmem:[#allocation5 + $0xb8] sm:$0xff]  ;;  %v57_v19 = vld [vmem:[#allocation5 + $0x30] sm:$0xff] }
  0x12   :  { %96 = vmatpush.msra.mxu0 %v63_v6  ;;  %v73_v20 = vld [vmem:[#allocation5 + $0xb0] sm:$0xff]  ;;  %v56_v21 = vld [vmem:[#allocation5 + $0x28] sm:$0xff]  ;;  %v55_v23 = vld [vmem:[#allocation5 + $0x20] sm:$0xff] }
  0x13   :  { %116 = vmatpush.msra.mxu1 %v79_v7  ;;  %v72_v22 = vld [vmem:[#allocation5 + $0xa8] sm:$0xff]  ;;  %v71_v24 = vld [vmem:[#allocation5 + $0xa0] sm:$0xff]  ;;  %v54_v25 = vld [vmem:[#allocation5 + $0x18] sm:$0xff] }
  0x14   :  { %97 = vmatpush.msra.mxu0 %v62_v8  ;;  %v70_v26 = vld [vmem:[#allocation5 + $0x98] sm:$0xff]  ;;  %v53_v27 = vld [vmem:[#allocation5 + $0x10] sm:$0xff]  ;;  %v52_v29 = vld [vmem:[#allocation5 + $0x8] sm:$0xff] }
  0x15   :  { %117 = vmatpush.msra.mxu1 %v78_v9  ;;  %v69_v28 = vld [vmem:[#allocation5 + $0x90] sm:$0xff]  ;;  %v68_v30 = vld [vmem:[#allocation5 + $0x88] sm:$0xff]  ;;  %v51_v31 = vld [vmem:[#allocation5] sm:$0xff] }
  0x16   :  { %98 = vmatpush.msra.mxu0 %v61_v10  ;;  %v67_v32 = vld [vmem:[#allocation5 + $0x80] sm:$0xff]  ;;  %v288_v36 = vld [vmem:[%s467_s2] ss:$0 sm:$0xff]  ;;  %v141_v46 = vld [vmem:[%s469_s4 + $0x18] sm:$0xff] }
  0x17   :  { %118 = vmatpush.msra.mxu1 %v77_v11  ;;  %v89_v33 = vld.sshfl [vmem:[#allocation1] sm:$0xff pattern:$0x73625140]  ;;  %v90_v34 = vld.sshfl [vmem:[#allocation1 + $0x8] sm:$0xff pattern:$0x73625140] }
  0x18   :  { %99 = vmatpush.msra.mxu0 %v60_v12  ;;  %v138_v37 = vld [vmem:[%s469_s4] sm:$0xff]  ;;  %v140_v42 = vld [vmem:[%s469_s4 + $0x10] sm:$0xff]  ;;  %v139_v43 = vld [vmem:[%s469_s4 + $0x8] sm:$0xff] }
  0x19   :  { %119 = vmatpush.msra.mxu1 %v76_v13  ;;  %144 = vperm.xlu0 %286, %v138_v37   ;;  %v134_v45 = vld [vmem:[%s468_s3] sm:$0xff]  ;;  %v135_v47 = vld [vmem:[%s468_s3 + $0x8] sm:$0xff]  ;;  %v136_v48 = vld [vmem:[%s468_s3 + $0x10] sm:$0xff] }
  0x1a   :  { %100 = vmatpush.msra.mxu0 %v59_v15  ;;  %154 = vperm.xlu1 %287, %v140_v42   ;;  %v137_v49 = vld [vmem:[%s468_s3 + $0x18] sm:$0xff] }
  0x1b   :  { %120 = vmatpush.msra.mxu1 %v75_v16 }
  0x1c   :  { %101 = vmatpush.msra.mxu0 %v58_v17 }
  0x1d   :  { %121 = vmatpush.msra.mxu1 %v74_v18 }
  0x1e   :  { %102 = vmatpush.msra.mxu0 %v57_v19 }
  0x1f   :  { %122 = vmatpush.msra.mxu1 %v73_v20 }
  0x20   :  { %103 = vmatpush.msra.mxu0 %v56_v21 }
  0x21   :  { %123 = vmatpush.msra.mxu1 %v72_v22  ;;  %149 = vperm.xlu0 %286, %v139_v43  }
  0x22   :  { %104 = vmatpush.msra.mxu0 %v55_v23  ;;  %159 = vperm.xlu1 %287, %v141_v46  }
  0x23   :  { %124 = vmatpush.msra.mxu1 %v71_v24 }
  0x24   :  { %105 = vmatpush.msra.mxu0 %v54_v25 }
  0x25   :  { %125 = vmatpush.msra.mxu1 %v70_v26 }
  0x26   :  { %106 = vmatpush.msra.mxu0 %v53_v27 }
  0x27   :  { %126 = vmatpush.msra.mxu1 %v69_v28 }
  0x28   :  { %107 = vmatpush.msra.mxu0 %v52_v29 }
  0x29   :  { %127 = vmatpush.msra.mxu1 %v68_v30 }
  0x2a   :  { %108 = vmatpush.msra.mxu0 %v51_v31 }
  0x2b   :  { %128 = vmatpush.msra.mxu1 %v67_v32  ;;  %109 = vmatmul.f32.vlgmr.msra.gmra.mxu0 %v89_v33 }
  0x2c   :  { %129 = vmatmul.f32.vlgmr.msra.gmra.mxu1 %v90_v34 }
  0x8b   :  { %v145_v50 = vpop.permute.xlu0 %144 }
  0x8c   :  { %v155_v56 = vpop.permute.xlu1 %154 }
  0x93   :  { %v150_v53 = vpop.permute.xlu0 %149 }
  0x94   :  { %v160_v0 = vpop.permute.xlu1 %159 }
  0xa8   :  { %v110_v38 = vpop.f32.mrf.mxu0 }
  0xa9   :  { %v130_v39 = vpop.f32.mrf.mxu1  ;;  %v111_v40 = vadd.f32 %v288_v36, %v110_v38 }
  0xab   :  { %v131_v41 = vadd.f32 %v130_v39, %v111_v40 }
  0xad   :  { %289 = vtanh.f32 %v131_v41 }
  0xb3   :  { %v290_v44 = vpop.eup %289 }
  0xb4   :  { %177 = vmatpush.xpose.msra.mxu2 %v290_v44 }
  0xb7   :  { %178 = vmatmul.f32.vlgmr.msra.gmra.mxu2 %v134_v45 }
  0xbf   :  { %181 = vmatmul.f32.gmra.mxu2 %v135_v47 }
  0xc7   :  { %184 = vmatmul.f32.gmra.mxu2 %v136_v48 }
  0xcf   :  { %187 = vmatmul.f32.gmra.mxu2 %v137_v49 }
 0x13a   :  { %v179_v51 = vpop.f32.mrf.mxu2 }
 0x13b   :  { %v180_v52 = vadd.f32 %v179_v51, %v145_v50 }
 0x13d   :  { %192 = vst.msk [vmem:[#allocation2] sm:$0xff] %vm191_vm0, %v180_v52 }
 0x142   :  { %v182_v54 = vpop.f32.mrf.mxu2 }
 0x143   :  { %v183_v55 = vadd.f32 %v182_v54, %v150_v53 }
 0x144   :  { %v196_v59 = vld [vmem:[#allocation2] sm:$0xf]  ;;  %v197_v60 = vld [vmem:[#allocation2 + $0x4] sm:$0xf] }
 0x145   :  { %193 = vst.msk [vmem:[#allocation2 + $0x8] sm:$0xff] %vm191_vm0, %v183_v55  ;;  %v198_v62 = vmax.f32 %v196_v59, %v197_v60 }
 0x14a   :  { %v185_v57 = vpop.f32.mrf.mxu2 }
 0x14b   :  { %v186_v58 = vadd.f32 %v185_v57, %v155_v56 }
 0x14c   :  { %v199_v61 = vld [vmem:[#allocation2 + $0x8] sm:$0xf]  ;;  %v201_v3 = vld [vmem:[#allocation2 + $0xc] sm:$0xf] }
 0x14d   :  { %194 = vst.msk [vmem:[#allocation2 + $0x10] sm:$0xff] %vm191_vm0, %v186_v58  ;;  %v200_v63 = vmax.f32 %v198_v62, %v199_v61 }
 0x14f   :  { %v202_v5 = vmax.f32 %v200_v63, %v201_v3 }
 0x152   :  { %v188_v1 = vpop.f32.mrf.mxu2 }
 0x153   :  { %v189_v2 = vadd.f32 %v188_v1, %v160_v0 }
 0x154   :  { %v203_v4 = vld [vmem:[#allocation2 + $0x10] sm:$0xf]  ;;  %v205_v7 = vld [vmem:[#allocation2 + $0x14] sm:$0xf] }
 0x155   :  { %195 = vst.msk [vmem:[#allocation2 + $0x18] sm:$0xff] %vm191_vm0, %v189_v2  ;;  %v204_v6 = vmax.f32 %v202_v5, %v203_v4 }
 0x157   :  { %v206_v8 = vmax.f32 %v204_v6, %v205_v7 }
 0x15c   :  { %v207_v9 = vld [vmem:[#allocation2 + $0x18] sm:$0xf]  ;;  %v209_v11 = vld [vmem:[#allocation2 + $0x1c] sm:$0xf] }
 0x15d   :  { %v208_v10 = vmax.f32 %v206_v8, %v207_v9 }
 0x15f   :  { %v210_v12 = vmax.f32 %v208_v10, %v209_v11 }
 0x161   :  { %v211_v13 = vsub.f32 %v196_v59, %v210_v12  ;;  %v215_v14 = vsub.f32 %v197_v60, %v210_v12  ;;  %v219_v15 = vsub.f32 %v199_v61, %v210_v12  ;;  %v223_v16 = vsub.f32 %v201_v3, %v210_v12 }
 0x162   :  { %v227_v20 = vsub.f32 %v203_v4, %v210_v12  ;;  %v231_v22 = vsub.f32 %v205_v7, %v210_v12  ;;  %v235_v24 = vsub.f32 %v207_v9, %v210_v12  ;;  %v239_v26 = vsub.f32 %v209_v11, %v210_v12 }
 0x163   :  { %v212_v17 = vmul.f32 1.442695, %v211_v13  ;;  %v216_v18 = vmul.f32 1.442695, %v215_v14  ;;  %v220_v19 = vmul.f32 1.442695, %v219_v15 }
 0x164   :  { %v224_v21 = vmul.f32 1.442695, %v223_v16  ;;  %v228_v23 = vmul.f32 1.442695, %v227_v20  ;;  %v232_v25 = vmul.f32 1.442695, %v231_v22 }
 0x165   :  { %291 = vpow2.f32 %v212_v17  ;;  %v236_v29 = vmul.f32 1.442695, %v235_v24  ;;  %v240_v32 = vmul.f32 1.442695, %v239_v26 }
 0x166   :  { %293 = vpow2.f32 %v216_v18 }
 0x167   :  { %295 = vpow2.f32 %v220_v19 }
 0x168   :  { %297 = vpow2.f32 %v224_v21 }
 0x169   :  { %299 = vpow2.f32 %v228_v23 }
 0x16a   :  { %301 = vpow2.f32 %v232_v25 }
 0x16b   :  { %v292_v27 = vpop.eup %291  ;;  %303 = vpow2.f32 %v236_v29 }
 0x16c   :  { %v294_v28 = vpop.eup %293  ;;  %305 = vpow2.f32 %v240_v32 }
 0x16d   :  { %v218_v30 = vadd.f32 %v294_v28, %v292_v27  ;;  %v296_v31 = vpop.eup %295 }
 0x16e   :  { %v298_v34 = vpop.eup %297 }
 0x16f   :  { %v222_v33 = vadd.f32 %v296_v31, %v218_v30  ;;  %v300_v36 = vpop.eup %299 }
 0x170   :  { %v302_v38 = vpop.eup %301 }
 0x171   :  { %v226_v35 = vadd.f32 %v298_v34, %v222_v33  ;;  %v304_v40 = vpop.eup %303 }
 0x172   :  { %v306_v42 = vpop.eup %305 }
 0x173   :  { %v230_v37 = vadd.f32 %v300_v36, %v226_v35 }
 0x175   :  { %v234_v39 = vadd.f32 %v302_v38, %v230_v37 }
 0x177   :  { %v238_v41 = vadd.f32 %v304_v40, %v234_v39 }
 0x179   :  { %v242_v43 = vadd.f32 %v306_v42, %v238_v41 }
 0x17b   :  { %307 = vrcp.f32 %v242_v43  ;;  %v254_v47 = vand.u32 2147483648, %v242_v43  ;;  %v252_v49 = vand.u32 2147483647, %v242_v43  ;;  %vm248_vm2 = vweird.f32 %v242_v43 }
 0x17d   :  { %v255_v51 = vor.u32 1.1754944e-38, %v254_v47  ;;  %vm253_vm4 = vcmp.eq.f32.partialorder %v252_v49, 8.507059e+37 }
 0x181   :  { %v308_v44 = vpop.eup %307 }
 0x182   :  { %v244_v45 = vmul.f32 %v308_v44, %v242_v43  ;;  %vm249_vm1 = vweird.f32 %v308_v44 }
 0x183   :  { %vm250_vm3 = vmor %vm248_vm2, %vm249_vm1 }
 0x184   :  { %v245_v46 = vsub.f32 1.0, %v244_v45 }
 0x186   :  { %v246_v48 = vmul.f32 %v308_v44, %v245_v46 }
 0x188   :  { %v247_v50 = vadd.f32 %v308_v44, %v246_v48 }
 0x18a   :  { %v251_v52 = vsel %vm250_vm3, %v308_v44, %v247_v50 }
 0x18b   :  { %v256_v53 = vsel %vm253_vm4, %v255_v51, %v251_v52 }
 0x18c   :  { %v258_v54 = vmul.f32 %v292_v27, %v256_v53  ;;  %v261_v55 = vmul.f32 %v294_v28, %v256_v53  ;;  %v263_v56 = vmul.f32 %v296_v31, %v256_v53  ;;  %v265_v57 = vmul.f32 %v298_v34, %v256_v53 }
 0x18d   :  { %v267_v58 = vmul.f32 %v300_v36, %v256_v53  ;;  %v269_v59 = vmul.f32 %v302_v38, %v256_v53  ;;  %v271_v60 = vmul.f32 %v304_v40, %v256_v53  ;;  %v273_v61 = vmul.f32 %v306_v42, %v256_v53 }
 0x18e   :  { %260 = vst.msk [vmem:[%s470_s5] sm:$0xf] %vm259_vm5, %v258_v54 }
 0x18f   :  { %262 = vst.msk [vmem:[%s470_s5 + $0x4] sm:$0xf] %vm259_vm5, %v261_v55 }
 0x190   :  { %264 = vst.msk [vmem:[%s470_s5 + $0x8] sm:$0xf] %vm259_vm5, %v263_v56 }
 0x191   :  { %266 = vst.msk [vmem:[%s470_s5 + $0xc] sm:$0xf] %vm259_vm5, %v265_v57 }
 0x192   :  { %268 = vst.msk [vmem:[%s470_s5 + $0x10] sm:$0xf] %vm259_vm5, %v267_v58 }
 0x193   :  { %270 = vst.msk [vmem:[%s470_s5 + $0x14] sm:$0xf] %vm259_vm5, %v269_v59 }
 0x194   :  { %272 = vst.msk [vmem:[%s470_s5 + $0x18] sm:$0xf] %vm259_vm5, %v271_v60 }
 0x195   :  { %274 = vst.msk [vmem:[%s470_s5 + $0x1c] sm:$0xf] %vm259_vm5, %v273_v61 }
 0x196   :  { %279 = vsyncpa [#allocation4], 1 }
 0x197   :  { %280 = vsyncpa [#allocation6], 1 }

</bundles_post_ra>
